<compile_context>
chip_gen: v5e
topology: v5e:2x2
jax: 0.10.0
libtpu: 0.0.40
codegen_flags: <defaults>
</compile_context>

<pallas_src>
import jax
import jax.numpy as jnp
from jax.experimental import pallas as pl
from jax.experimental.pallas import tpu as pltpu


_FOLD_MAX_NODES = 256                 # fold encoder+decoder only when N is small
_VMEM_BUDGET_BYTES = 32 * 1024 * 1024  # safe on v5e/v6e (128 MiB) and v7x (64 MiB phys)


def _round_up(x, m):
    return ((x + m - 1) // m) * m


def _choose_tm(m_rows, in_feats, out_feats, resident_bytes, vmem_budget_bytes):
    """Pick the row-tile size TM.

    VMEM per grid step ~= 2 * 4 * TM * (in_feats + out_feats)  (double-buffered f32
    x and out tiles) + resident_bytes (double-buffered grid-invariant weights/bias).
    The 20% slack also covers small in-kernel intermediates (e.g. the (TM, latent)
    encoder output in the two-stage path).
    """
    per_row_bytes = 2 * 4 * (in_feats + out_feats)
    avail = int(0.8 * vmem_budget_bytes) - resident_bytes
    tm_vmem = max(8, (avail // per_row_bytes) // 8 * 8)
    tm = min(4096, tm_vmem, _round_up(m_rows, 8))
    # Keep >=2 row tiles when M is large so the "parallel" axis can actually shard
    # across TensorCores; neutral/off for small M where per-step overhead dominates.
    if m_rows >= 2048:
        tm = min(tm, _round_up(pl.cdiv(m_rows, 2), 8))
    # Balance tiles so the ragged last tile is not pathological (e.g. M=600, TM=512).
    n_tiles = pl.cdiv(m_rows, tm)
    tm = _round_up(pl.cdiv(m_rows, n_tiles), 8)
    if tm >= m_rows:
        tm = m_rows  # single full-extent block is always a legal block shape
    return tm


def _fused_ae_kernel(x_ref, w_ref, b_ref, o_ref):
    # Encoder and decoder folded into one (N, N) weight: one MXU matmul + bias + sigmoid.
    y = jnp.dot(x_ref[...], w_ref[...], preferred_element_type=jnp.float32)
    o_ref[...] = jax.nn.sigmoid(y + b_ref[...]).astype(o_ref.dtype)


def _two_stage_ae_kernel(x_ref, we_ref, be_ref, wd_ref, bd_ref, o_ref):
    # Keeps the rank-`latent` structure; the (TM, latent) intermediate never hits HBM.
    h = jnp.dot(x_ref[...], we_ref[...], preferred_element_type=jnp.float32)
    h = h + be_ref[...]
    y = jnp.dot(h, wd_ref[...], preferred_element_type=jnp.float32)
    o_ref[...] = jax.nn.sigmoid(y + bd_ref[...]).astype(o_ref.dtype)


def model1_variant3_forward(x, params, num_nodes, edge_index=None,
                            batch_size=None, batch_index=None):
    """x: any shape whose total size is divisible by num_nodes (flattened row-major).

    edge_index / batch_size / batch_index are accepted but unused, matching the
    PyTorch forward.
    """
    we, be, wd, bd = params  # (N, L), (1, L), (L, N), (1, N)
    x2d = x.reshape(-1, num_nodes).astype(jnp.float32)   # x.view(-1, num_nodes)
    M = x2d.shape[0]
    latent = we.shape[1]

    compiler_params = pltpu.CompilerParams(
        dimension_semantics=("parallel",),
        vmem_limit_bytes=_VMEM_BUDGET_BYTES,
    )

    if num_nodes <= _FOLD_MAX_NODES:
        # Small feature dim: fold the two linears once in the wrapper.
        #   (x @ we + be) @ wd + bd == x @ (we @ wd) + (be @ wd + bd)
        # TODO(synk): fold assumes Encoder/Decoder are pure Linear layers.
        W = we.astype(jnp.float32) @ wd.astype(jnp.float32)          # (N, N)
        b = be.astype(jnp.float32) @ wd.astype(jnp.float32) + bd.astype(jnp.float32)

        resident_bytes = 2 * 4 * (num_nodes * num_nodes + num_nodes)
        TM = _choose_tm(M, num_nodes, num_nodes, resident_bytes, _VMEM_BUDGET_BYTES)
        grid = (pl.cdiv(M, TM),)

        cost = pl.CostEstimate(
            flops=2 * M * num_nodes * num_nodes,
            transcendentals=M * num_nodes,
            bytes_accessed=4 * (2 * M * num_nodes
                                + num_nodes * num_nodes + num_nodes),
        )

        return pl.pallas_call(
            _fused_ae_kernel,
            out_shape=jax.ShapeDtypeStruct((M, num_nodes), jnp.float32),
            grid=grid,
            in_specs=[
                pl.BlockSpec((TM, num_nodes), lambda i: (i, 0)),          # row tiles
                pl.BlockSpec((num_nodes, num_nodes), lambda i: (0, 0)),   # resident W
                pl.BlockSpec((1, num_nodes), lambda i: (0, 0)),           # resident b
            ],
            out_specs=pl.BlockSpec((TM, num_nodes), lambda i: (i, 0)),
            compiler_params=compiler_params,
            cost_estimate=cost,
        )(x2d, W, b)

    # Large feature dim: do NOT destroy the rank-`latent` structure — two matmuls,
    # intermediate stays on-chip.
    we_f = we.astype(jnp.float32)
    be_f = be.astype(jnp.float32)
    wd_f = wd.astype(jnp.float32)
    bd_f = bd.astype(jnp.float32)

    resident_bytes = 2 * 4 * (2 * num_nodes * latent + latent + num_nodes)
    TM = _choose_tm(M, num_nodes, num_nodes, resident_bytes, _VMEM_BUDGET_BYTES)
    grid = (pl.cdiv(M, TM),)

    cost = pl.CostEstimate(
        flops=4 * M * num_nodes * latent,
        transcendentals=M * num_nodes,
        bytes_accessed=4 * (2 * M * num_nodes
                            + 2 * num_nodes * latent + latent + num_nodes),
    )

    return pl.pallas_call(
        _two_stage_ae_kernel,
        out_shape=jax.ShapeDtypeStruct((M, num_nodes), jnp.float32),
        grid=grid,
        in_specs=[
            pl.BlockSpec((TM, num_nodes), lambda i: (i, 0)),         # row tiles
            pl.BlockSpec((num_nodes, latent), lambda i: (0, 0)),     # resident we
            pl.BlockSpec((1, latent), lambda i: (0, 0)),             # resident be
            pl.BlockSpec((latent, num_nodes), lambda i: (0, 0)),     # resident wd
            pl.BlockSpec((1, num_nodes), lambda i: (0, 0)),          # resident bd
        ],
        out_specs=pl.BlockSpec((TM, num_nodes), lambda i: (i, 0)),
        compiler_params=compiler_params,
        cost_estimate=cost,
    )(x2d, we_f, be_f, wd_f, bd_f)


def init_params(key, num_nodes, latent_space_dim):
    """Deterministic synthetic parameter init (uniform, Linear-style fan-in scale)."""
    k1, k2, k3, k4 = jax.random.split(key, 4)
    lim_e = 1.0 / jnp.sqrt(num_nodes)
    lim_d = 1.0 / jnp.sqrt(latent_space_dim)
    we = jax.random.uniform(k1, (num_nodes, latent_space_dim), jnp.float32, -lim_e, lim_e)
    be = jax.random.uniform(k2, (1, latent_space_dim), jnp.float32, -lim_e, lim_e)
    wd = jax.random.uniform(k3, (latent_space_dim, num_nodes), jnp.float32, -lim_d, lim_d)
    bd = jax.random.uniform(k4, (1, num_nodes), jnp.float32, -lim_d, lim_d)
    return we, be, wd, bd


if __name__ == "__main__":
    num_nodes = 16
    latent_space_dim = 8

    key = jax.random.PRNGKey(0)
    kx, kp, kx2, kp2 = jax.random.split(key, 4)

    # --- Small / fused path: (2, 4, 16, 16) -> view(-1, 16) = 128 rows. ---
    x = jax.random.normal(kx, (2, 4, 16, num_nodes), jnp.float32)
    params = init_params(kp, num_nodes, latent_space_dim)

    # edge_index / batch_size / batch_index are unused by the forward pass.
    edge_index = jnp.zeros((2, 4), jnp.int32)
    batch_index = jnp.zeros((128,), jnp.int32)

    out = model1_variant3_forward(x, params, num_nodes,
                                  edge_index=edge_index,
                                  batch_size=2,
                                  batch_index=batch_index)
    jax.block_until_ready(out)

    we, be, wd, bd = params
    x2d = x.reshape(-1, num_nodes)
    ref = jax.nn.sigmoid((x2d @ we + be) @ wd + bd)
    assert out.shape == (x2d.shape[0], num_nodes)
    assert jnp.allclose(out, ref, atol=1e-5, rtol=1e-5)

    # --- Large-feature path (num_nodes > 256): two-stage kernel, no weight fold. ---
    big_nodes = 384
    xb = jax.random.normal(kx2, (48, big_nodes), jnp.float32)
    params_b = init_params(kp2, big_nodes, latent_space_dim)
    out_b = model1_variant3_forward(xb, params_b, big_nodes)
    jax.block_until_ready(out_b)

    we_b, be_b, wd_b, bd_b = params_b
    ref_b = jax.nn.sigmoid((xb @ we_b + be_b) @ wd_b + bd_b)
    assert out_b.shape == (48, big_nodes)
    assert jnp.allclose(out_b, ref_b, atol=1e-5, rtol=1e-5)

    print("KERNEL_OK")
</pallas_src>

<mosaic_0001>
module attributes {stable_mosaic.version = 11 : i64} {
  func.func @_fused_ae_kernel(%arg0: i32, %arg1: memref<128x16xf32, #tpu.memory_space<vmem>>, %arg2: memref<16x16xf32, #tpu.memory_space<vmem>>, %arg3: memref<1x16xf32, #tpu.memory_space<vmem>>, %arg4: memref<128x16xf32, #tpu.memory_space<vmem>>) attributes {dimension_semantics = [#tpu.dimension_semantics<parallel>], iteration_bounds = array<i64: 1>, scalar_prefetch = 0 : i64, scratch_operands = 0 : i64, tpu.core_type = #tpu.core_type<tc>, window_params = [{transform_indices = @transform_0, window_bounds = array<i64: 128, 16>}, {pipeline_mode = #tpu.pipeline_mode<synchronous>, transform_indices = @transform_1, window_bounds = array<i64: 16, 16>}, {pipeline_mode = #tpu.pipeline_mode<synchronous>, transform_indices = @transform_2, window_bounds = array<i64: 1, 16>}, {transform_indices = @transform_3, window_bounds = array<i64: 128, 16>}]} {
    %c0 = arith.constant 0 : index
    %c0_0 = arith.constant 0 : index
    %0 = vector.load %arg1[%c0, %c0_0] : memref<128x16xf32, #tpu.memory_space<vmem>>, vector<128x16xf32>
    %c0_1 = arith.constant 0 : index
    %c0_2 = arith.constant 0 : index
    %1 = vector.load %arg2[%c0_1, %c0_2] : memref<16x16xf32, #tpu.memory_space<vmem>>, vector<16x16xf32>
    %cst = arith.constant dense<0.000000e+00> : vector<128x16xf32>
    %2 = tpu.matmul %0, %1, %cst {dimension_numbers = #tpu.dot_dimension_numbers<[1], [0], [0], [1], [0, 0, 1, 1], [], []>} : vector<128x16xf32>, vector<16x16xf32>, vector<128x16xf32> -> vector<128x16xf32>
    %c0_3 = arith.constant 0 : index
    %c0_4 = arith.constant 0 : index
    %3 = vector.load %arg3[%c0_3, %c0_4] : memref<1x16xf32, #tpu.memory_space<vmem>>, vector<1x16xf32>
    %4 = vector.broadcast %3 : vector<1x16xf32> to vector<128x16xf32>
    %5 = arith.addf %2, %4 : vector<128x16xf32>
    %6 = arith.negf %5 : vector<128x16xf32>
    %7 = math.exp %6 : vector<128x16xf32>
    %cst_5 = arith.constant 1.000000e+00 : f32
    %8 = vector.broadcast %cst_5 : f32 to vector<128x16xf32>
    %9 = arith.addf %8, %7 : vector<128x16xf32>
    %10 = arith.divf %8, %9 : vector<128x16xf32>
    %c0_6 = arith.constant 0 : index
    %c0_7 = arith.constant 0 : index
    %11 = vector.load %arg4[%c0_6, %c0_7] : memref<128x16xf32, #tpu.memory_space<vmem>>, vector<128x16xf32>
    tpu.vector_store %arg4[%c0_6, %c0_7], %10 {strides = array<i32>} : memref<128x16xf32, #tpu.memory_space<vmem>>, vector<128x16xf32>,
    return
  }
  func.func @transform_0(%arg0: i32) -> (i32, i32) {
    %c0_i32 = arith.constant 0 : i32
    %c0_i32_0 = arith.constant 0 : i32
    return %arg0, %c0_i32 : i32, i32
  }
  func.func @transform_1(%arg0: i32) -> (i32, i32) {
    %c0_i32 = arith.constant 0 : i32
    %c0_i32_0 = arith.constant 0 : i32
    %c0_i32_1 = arith.constant 0 : i32
    return %c0_i32, %c0_i32_0 : i32, i32
  }
  func.func @transform_2(%arg0: i32) -> (i32, i32) {
    %c0_i32 = arith.constant 0 : i32
    %c0_i32_0 = arith.constant 0 : i32
    %c0_i32_1 = arith.constant 0 : i32
    return %c0_i32, %c0_i32_0 : i32, i32
  }
  func.func @transform_3(%arg0: i32) -> (i32, i32) {
    %c0_i32 = arith.constant 0 : i32
    %c0_i32_0 = arith.constant 0 : i32
    return %arg0, %c0_i32 : i32, i32
  }
}

</mosaic_0001>

<bundles_post_ra>
// kernel: tpu_custom_call.1
= control target key start
LH: loop header
LB: loop body
LE: loop exit
PB: predicated region body
PF: predicated region fallthrough
CT: control target
= control target key end

     0   :  { %vm36_vm0 = vcmask 130048   ;;  %s950_s1 = inlined_call_operand.vmem [shape: f32[16,16], index: 1, kind: input, shape index: {}]   ;;  %s951_s0 = inlined_call_operand.vmem [shape: f32[128,16], index: 0, kind: input, shape index: {}]   ;;  %s952_s2 = inlined_call_operand.vmem [shape: f32[1,16], index: 2, kind: input, shape index: {}]   ;;  %s953_s3 = inlined_call_operand.vmem [shape: f32[128,16], index: 3, kind: output, shape index: {}]  }
   0x1   :  { %v31_v0 = vld [vmem:[%s950_s1 + $0x8] sm:$0xff]  ;;  %v30_v1 = vld [vmem:[%s950_s1] sm:$0xff]  ;;  %v16_v10 = vld [vmem:[%s951_s0 + $0x10] sm:$0xff] }
   0x2   :  { %99 = vmatpush.msra.mxu0 %v31_v0  ;;  %506 = vmatpush.msra.mxu1 %v31_v0  ;;  %v14_v2 = vld [vmem:[%s951_s0] sm:$0xff]  ;;  %v15_v6 = vld [vmem:[%s951_s0 + $0x8] sm:$0xff]  ;;  %v20_v11 = vld [vmem:[%s951_s0 + $0x30] sm:$0xff] }
   0x3   :  { %507 = vmatpush.msra.mxu2 %v31_v0  ;;  %508 = vmatpush.msra.mxu3 %v31_v0  ;;  %v18_v3 = vld [vmem:[%s951_s0 + $0x20] sm:$0xff]  ;;  %v19_v7 = vld [vmem:[%s951_s0 + $0x28] sm:$0xff]  ;;  %v24_v12 = vld [vmem:[%s951_s0 + $0x50] sm:$0xff] }
   0x4   :  { %100 = vmatpush.msra.mxu0 %v30_v1  ;;  %509 = vmatpush.msra.mxu1 %v30_v1  ;;  %v22_v4 = vld [vmem:[%s951_s0 + $0x40] sm:$0xff]  ;;  %v23_v8 = vld [vmem:[%s951_s0 + $0x48] sm:$0xff]  ;;  %v28_v13 = vld [vmem:[%s951_s0 + $0x70] sm:$0xff] }
   0x5   :  { %v26_v5 = vld [vmem:[%s951_s0 + $0x60] sm:$0xff]  ;;  %510 = vmatpush.msra.mxu2 %v30_v1  ;;  %511 = vmatpush.msra.mxu3 %v30_v1  ;;  %v27_v9 = vld [vmem:[%s951_s0 + $0x68] sm:$0xff]  ;;  %v17_v14 = vld [vmem:[%s951_s0 + $0x18] sm:$0xff] }
   0x6   :  { %474 = vmatmul.msk.f32.vlgmr.msra.gmra.mxu0 %vm36_vm0, %v14_v2  ;;  %478 = vmatmul.msk.f32.vlgmr.msra.gmra.mxu1 %vm36_vm0, %v18_v3  ;;  %v21_v15 = vld [vmem:[%s951_s0 + $0x38] sm:$0xff]  ;;  %v670_v18 = vld [vmem:[%s952_s2] ss:$0 sm:$0xff] }
   0x7   :  { %482 = vmatmul.msk.f32.vlgmr.msra.gmra.mxu2 %vm36_vm0, %v22_v4  ;;  %486 = vmatmul.msk.f32.vlgmr.msra.gmra.mxu3 %vm36_vm0, %v26_v5  ;;  %v25_v16 = vld [vmem:[%s951_s0 + $0x58] sm:$0xff] }
   0x8   :  { %v29_v17 = vld [vmem:[%s951_s0 + $0x78] sm:$0xff] }
   0xe   :  { %475 = vmatmul.msk.f32.gmra.mxu0 %vm36_vm0, %v15_v6  ;;  %479 = vmatmul.msk.f32.gmra.mxu1 %vm36_vm0, %v19_v7 }
   0xf   :  { %483 = vmatmul.msk.f32.gmra.mxu2 %vm36_vm0, %v23_v8  ;;  %487 = vmatmul.msk.f32.gmra.mxu3 %vm36_vm0, %v27_v9 }
  0x16   :  { %476 = vmatmul.msk.f32.gmra.mxu0 %vm36_vm0, %v16_v10  ;;  %480 = vmatmul.msk.f32.gmra.mxu1 %vm36_vm0, %v20_v11 }
  0x17   :  { %484 = vmatmul.msk.f32.gmra.mxu2 %vm36_vm0, %v24_v12  ;;  %488 = vmatmul.msk.f32.gmra.mxu3 %vm36_vm0, %v28_v13 }
  0x1e   :  { %477 = vmatmul.msk.f32.gmra.mxu0 %vm36_vm0, %v17_v14  ;;  %481 = vmatmul.msk.f32.gmra.mxu1 %vm36_vm0, %v21_v15 }
  0x1f   :  { %485 = vmatmul.msk.f32.gmra.mxu2 %vm36_vm0, %v25_v16  ;;  %489 = vmatmul.msk.f32.gmra.mxu3 %vm36_vm0, %v29_v17 }
  0x83   :  { %v102_v19 = vpop.f32.mrf.mxu0  ;;  %v114_v20 = vpop.f32.mrf.mxu1 }
  0x84   :  { %v103_v21 = vadd.f32 %v670_v18, %v102_v19  ;;  %v115_v22 = vadd.f32 %v670_v18, %v114_v20 }
  0x86   :  { %v490_v23 = vmul.f32 -1.442695, %v103_v21  ;;  %v494_v24 = vmul.f32 -1.442695, %v115_v22 }
  0x88   :  { %513 = vpow2.f32 %v490_v23 }
  0x89   :  { %515 = vpow2.f32 %v494_v24 }
  0x8a   :  { %v126_v25 = vpop.f32.mrf.mxu2  ;;  %v138_v26 = vpop.f32.mrf.mxu3 }
  0x8b   :  { %v127_v27 = vadd.f32 %v670_v18, %v126_v25  ;;  %v139_v28 = vadd.f32 %v670_v18, %v138_v26  ;;  %v105_v29 = vpop.f32.mrf.mxu0  ;;  %v117_v30 = vpop.f32.mrf.mxu1 }
  0x8c   :  { %v106_v31 = vadd.f32 %v670_v18, %v105_v29  ;;  %v118_v32 = vadd.f32 %v670_v18, %v117_v30 }
  0x8d   :  { %v498_v33 = vmul.f32 -1.442695, %v127_v27  ;;  %v502_v34 = vmul.f32 -1.442695, %v139_v28 }
  0x8e   :  { %v514_v35 = vpop.eup %513  ;;  %v491_v38 = vmul.f32 -1.442695, %v106_v31  ;;  %v495_v40 = vmul.f32 -1.442695, %v118_v32 }
  0x8f   :  { %v516_v36 = vpop.eup %515  ;;  %v678_v37 = vadd.f32 1.0, %v514_v35  ;;  %517 = vpow2.f32 %v498_v33 }
  0x90   :  { %v680_v39 = vadd.f32 1.0, %v516_v36  ;;  %519 = vpow2.f32 %v502_v34 }
  0x91   :  { %521 = vrcp.f32 %v678_v37  ;;  %v223_v44 = vand.u32 2147483647, %v678_v37  ;;  %v225_v45 = vand.u32 2147483648, %v678_v37  ;;  %vm219_vm1 = vweird.f32 %v678_v37 }
  0x92   :  { %523 = vrcp.f32 %v680_v39  ;;  %v129_v41 = vpop.f32.mrf.mxu2  ;;  %v141_v42 = vpop.f32.mrf.mxu3  ;;  %v283_v48 = vand.u32 2147483647, %v680_v39  ;;  %v285_v52 = vand.u32 2147483648, %v680_v39  ;;  %vm279_vm2 = vweird.f32 %v680_v39 }
  0x93   :  { %525 = vpow2.f32 %v491_v38  ;;  %v130_v43 = vadd.f32 %v670_v18, %v129_v41  ;;  %v108_v46 = vpop.f32.mrf.mxu0  ;;  %v142_v50 = vadd.f32 %v670_v18, %v141_v42  ;;  %v120_v57 = vpop.f32.mrf.mxu1  ;;  %vm698_vm3 = vcmp.eq.f32.partialorder %v223_v44, 8.507059e+37 }
  0x94   :  { %527 = vpow2.f32 %v495_v40  ;;  %v109_v56 = vadd.f32 %v670_v18, %v108_v46  ;;  %v226_v61 = vor.u32 1.1754944e-38, %v225_v45  ;;  %vm704_vm4 = vcmp.eq.f32.partialorder %v283_v48, 8.507059e+37 }
  0x95   :  { %v518_v47 = vpop.eup %517  ;;  %v499_v49 = vmul.f32 -1.442695, %v130_v43  ;;  %v503_v1 = vmul.f32 -1.442695, %v142_v50  ;;  %v286_v4 = vor.u32 1.1754944e-38, %v285_v52  ;;  %v121_v5 = vadd.f32 %v670_v18, %v120_v57 }
  0x96   :  { %v520_v51 = vpop.eup %519  ;;  %v690_v53 = vadd.f32 1.0, %v518_v47  ;;  %v492_v8 = vmul.f32 -1.442695, %v109_v56 }
  0x97   :  { %v522_v54 = vpop.eup %521  ;;  %v694_v55 = vadd.f32 1.0, %v520_v51  ;;  %v719_v19 = vmul.f32 -1.442695, %v121_v5 }
  0x98   :  { %v524_v58 = vpop.eup %523  ;;  %v215_v59 = vmul.f32 %v522_v54, %v678_v37  ;;  %529 = vrcp.f32 %v690_v53  ;;  %vm220_vm5 = vweird.f32 %v522_v54  ;;  %v343_v7 = vand.u32 2147483647, %v690_v53 }
  0x99   :  { %v526_v62 = vpop.eup %525  ;;  %v275_v63 = vmul.f32 %v524_v58, %v680_v39  ;;  %531 = vpow2.f32 %v499_v49  ;;  %v345_v10 = vand.u32 2147483648, %v690_v53  ;;  %vm280_vm6 = vweird.f32 %v524_v58  ;;  %vm221_vm7 = vmor %vm219_vm1, %vm220_vm5 }
  0x9a   :  { %v528_v2 = vpop.eup %527  ;;  %v216_v3 = vsub.f32 1.0, %v215_v59  ;;  %533 = vrcp.f32 %v694_v55  ;;  %v712_v11 = vadd.f32 1.0, %v526_v62  ;;  %v403_v14 = vand.u32 2147483647, %v694_v55  ;;  %v132_v23 = vpop.f32.mrf.mxu2  ;;  %vm281_vm10 = vmor %vm279_vm2, %vm280_vm6 }
  0x9b   :  { %v276_v6 = vsub.f32 1.0, %v275_v63  ;;  %v714_v12 = vadd.f32 1.0, %v528_v2  ;;  %535 = vpow2.f32 %v503_v1  ;;  %v405_v17 = vand.u32 2147483648, %v694_v55  ;;  %v144_v50 = vpop.f32.mrf.mxu3  ;;  %v111_v5 = vpop.f32.mrf.mxu0 }
  0x9c   :  { %v217_v9 = vmul.f32 %v522_v54, %v216_v3  ;;  %537 = vrcp.f32 %v712_v11  ;;  %vm339_vm8 = vweird.f32 %v690_v53  ;;  %vm399_vm9 = vweird.f32 %v694_v55 }
  0x9d   :  { %v277_v13 = vmul.f32 %v524_v58, %v276_v6  ;;  %vm730_vm11 = vcmp.eq.f32.partialorder %v343_v7, 8.507059e+37  ;;  %v346_v27 = vor.u32 1.1754944e-38, %v345_v10  ;;  %539 = vrcp.f32 %v714_v12 }
  0x9e   :  { %v530_v15 = vpop.eup %529  ;;  %v218_v16 = vadd.f32 %v522_v54, %v217_v9  ;;  %vm738_vm12 = vcmp.eq.f32.partialorder %v403_v14, 8.507059e+37  ;;  %v406_v34 = vor.u32 1.1754944e-38, %v405_v17  ;;  %v238_v35 = vand.u32 2147483647, %v712_v11 }
  0x9f   :  { %v532_v20 = vpop.eup %531  ;;  %v278_v21 = vadd.f32 %v524_v58, %v277_v13  ;;  %v335_v22 = vmul.f32 %v530_v15, %v690_v53  ;;  %v133_v36 = vadd.f32 %v670_v18, %v132_v23  ;;  %vm340_vm13 = vweird.f32 %v530_v15  ;;  %v123_v23 = vpop.f32.mrf.mxu1 }
  0xa0   :  { %v534_v24 = vpop.eup %533  ;;  %v222_v25 = vsel %vm221_vm7, %v522_v54, %v218_v16  ;;  %v754_v40 = vadd.f32 1.0, %v532_v20  ;;  %vm234_vm15 = vweird.f32 %v712_v11  ;;  %v240_v42 = vand.u32 2147483648, %v712_v11  ;;  %vm341_vm1 = vmor %vm339_vm8, %vm340_vm13 }
  0xa1   :  { %v227_v28 = vsel %vm698_vm3, %v226_v61, %v222_v25  ;;  %v282_v29 = vsel %vm281_vm10, %v524_v58, %v278_v21  ;;  %v336_v30 = vsub.f32 1.0, %v335_v22  ;;  %v395_v31 = vmul.f32 %v534_v24, %v694_v55  ;;  %v536_v37 = vpop.eup %535 }
  0xa2   :  { %454 = vst.msk [vmem:[%s953_s3] sm:$0xff] %vm36_vm0, %v227_v28  ;;  %v287_v33 = vsel %vm704_vm4, %v286_v4, %v282_v29  ;;  %v538_v41 = vpop.eup %537  ;;  %vm400_vm14 = vweird.f32 %v534_v24  ;;  %541 = vpow2.f32 %v492_v8  ;;  %v759_v46 = vadd.f32 1.0, %v536_v37 }
  0xa3   :  { %458 = vst.msk [vmem:[%s953_s3 + $0x20] sm:$0xff] %vm36_vm0, %v287_v33  ;;  %v337_v38 = vmul.f32 %v530_v15, %v336_v30  ;;  %v396_v39 = vsub.f32 1.0, %v395_v31  ;;  %v230_v45 = vmul.f32 %v538_v41, %v712_v11  ;;  %v540_v47 = vpop.eup %539  ;;  %vm763_vm2 = vcmp.eq.f32.partialorder %v238_v35, 8.507059e+37  ;;  %vm401_vm4 = vmor %vm399_vm9, %vm400_vm14 }
  0xa4   :  { %vm294_vm3 = vweird.f32 %v714_v12  ;;  %v298_v49 = vand.u32 2147483647, %v714_v12  ;;  %543 = vrcp.f32 %v754_v40  ;;  %v290_v56 = vmul.f32 %v540_v47, %v714_v12 }
  0xa5   :  { %v338_v43 = vadd.f32 %v530_v15, %v337_v38  ;;  %v397_v44 = vmul.f32 %v534_v24, %v396_v39  ;;  %v231_v54 = vsub.f32 1.0, %v230_v45  ;;  %vm235_vm5 = vweird.f32 %v538_v41 }
  0xa6   :  { %v300_v57 = vand.u32 2147483648, %v714_v12  ;;  %v358_v58 = vand.u32 2147483647, %v754_v40  ;;  %v291_v61 = vsub.f32 1.0, %v290_v56  ;;  %545 = vrcp.f32 %v759_v46  ;;  %vm236_vm8 = vmor %vm234_vm15, %vm235_vm5  ;;  %v135_v12 = vpop.f32.mrf.mxu2 }
  0xa7   :  { %v342_v51 = vsel %vm341_vm1, %v530_v15, %v338_v43  ;;  %v398_v52 = vadd.f32 %v534_v24, %v397_v44  ;;  %v232_v60 = vmul.f32 %v538_v41, %v231_v54  ;;  %v241_v63 = vor.u32 1.1754944e-38, %v240_v42 }
  0xa8   :  { %v347_v53 = vsel %vm730_vm11, %v346_v27, %v342_v51  ;;  %v542_v62 = vpop.eup %541  ;;  %vm785_vm6 = vcmp.eq.f32.partialorder %v298_v49, 8.507059e+37  ;;  %v360_v1 = vand.u32 2147483648, %v754_v40  ;;  %v292_v3 = vmul.f32 %v540_v47, %v291_v61  ;;  %v147_v27 = vpop.f32.mrf.mxu3 }
  0xa9   :  { %462 = vst.msk [vmem:[%s953_s3 + $0x40] sm:$0xff] %vm36_vm0, %v347_v53  ;;  %v402_v59 = vsel %vm401_vm4, %v534_v24, %v398_v52  ;;  %v233_v2 = vadd.f32 %v538_v41, %v232_v60  ;;  %vm295_vm7 = vweird.f32 %v540_v47  ;;  %v794_v4 = vadd.f32 1.0, %v542_v62 }
  0xaa   :  { %v407_v55 = vsel %vm738_vm12, %v406_v34, %v402_v59  ;;  %v544_v6 = vpop.eup %543  ;;  %v301_v7 = vor.u32 1.1754944e-38, %v300_v57  ;;  %vm354_vm9 = vweird.f32 %v754_v40  ;;  %547 = vpow2.f32 %v719_v19  ;;  %vm296_vm11 = vmor %vm294_vm3, %vm295_vm7 }
  0xab   :  { %466 = vst.msk [vmem:[%s953_s3 + $0x60] sm:$0xff] %vm36_vm0, %v407_v55  ;;  %v500_v8 = vmul.f32 -1.442695, %v133_v36  ;;  %v237_v9 = vsel %vm236_vm8, %v538_v41, %v233_v2  ;;  %v293_v10 = vadd.f32 %v540_v47, %v292_v3  ;;  %v350_v13 = vmul.f32 %v544_v6, %v754_v40 }
  0xac   :  { %vm802_vm10 = vcmp.eq.f32.partialorder %v358_v58, 8.507059e+37  ;;  %v145_v15 = vadd.f32 %v670_v18, %v144_v50  ;;  %v242_v11 = vsel %vm763_vm2, %v241_v63, %v237_v9  ;;  %v361_v16 = vor.u32 1.1754944e-38, %v360_v1  ;;  %v546_v19 = vpop.eup %545 }
  0xad   :  { %549 = vrcp.f32 %v794_v4  ;;  %v112_v17 = vadd.f32 %v670_v18, %v111_v5  ;;  %455 = vst.msk [vmem:[%s953_s3 + $0x8] sm:$0xff] %vm36_vm0, %v242_v11  ;;  %v297_v20 = vsel %vm296_vm11, %v540_v47, %v293_v10  ;;  %v351_v21 = vsub.f32 1.0, %v350_v13 }
  0xae   :  { %vm414_vm12 = vweird.f32 %v759_v46  ;;  %v418_v22 = vand.u32 2147483647, %v759_v46  ;;  %v302_v24 = vsel %vm785_vm6, %v301_v7, %v297_v20  ;;  %v410_v25 = vmul.f32 %v546_v19, %v759_v46 }
  0xaf   :  { %v420_v26 = vand.u32 2147483648, %v759_v46  ;;  %551 = vpow2.f32 %v500_v8  ;;  %459 = vst.msk [vmem:[%s953_s3 + $0x28] sm:$0xff] %vm36_vm0, %v302_v24  ;;  %v352_v28 = vmul.f32 %v544_v6, %v351_v21  ;;  %vm355_vm13 = vweird.f32 %v544_v6 }
  0xb0   :  { %vm415_vm14 = vweird.f32 %v546_v19  ;;  %v504_v29 = vmul.f32 -1.442695, %v145_v15  ;;  %v548_v30 = vpop.eup %547  ;;  %v411_v31 = vsub.f32 1.0, %v410_v25  ;;  %v493_v32 = vmul.f32 -1.442695, %v112_v17  ;;  %vm356_vm15 = vmor %vm354_vm9, %vm355_vm13 }
  0xb1   :  { %v124_v33 = vadd.f32 %v670_v18, %v123_v23  ;;  %v136_v34 = vadd.f32 %v670_v18, %v135_v12  ;;  %v353_v35 = vadd.f32 %v544_v6, %v352_v28  ;;  %v830_v36 = vadd.f32 1.0, %v548_v30  ;;  %vm416_vm3 = vmor %vm414_vm12, %vm415_vm14 }
  0xb2   :  { %553 = vpow2.f32 %v504_v29  ;;  %v148_v37 = vadd.f32 %v670_v18, %v147_v27  ;;  %v412_v39 = vmul.f32 %v546_v19, %v411_v31  ;;  %vm835_vm1 = vcmp.eq.f32.partialorder %v418_v22, 8.507059e+37 }
  0xb3   :  { %v550_v38 = vpop.eup %549  ;;  %555 = vpow2.f32 %v493_v32  ;;  %v497_v41 = vmul.f32 -1.442695, %v124_v33  ;;  %v501_v42 = vmul.f32 -1.442695, %v136_v34  ;;  %v357_v43 = vsel %vm356_vm15, %v544_v6, %v353_v35 }
  0xb4   :  { %v245_v45 = vmul.f32 %v550_v38, %v794_v4  ;;  %557 = vrcp.f32 %v830_v36  ;;  %v362_v18 = vsel %vm802_vm10, %v361_v16, %v357_v43  ;;  %v413_v48 = vadd.f32 %v546_v19, %v412_v39 }
  0xb5   :  { %v552_v47 = vpop.eup %551  ;;  %v421_v40 = vor.u32 1.1754944e-38, %v420_v26  ;;  %vm249_vm2 = vweird.f32 %v794_v4  ;;  %463 = vst.msk [vmem:[%s953_s3 + $0x48] sm:$0xff] %vm36_vm0, %v362_v18  ;;  %v253_v50 = vand.u32 2147483647, %v794_v4  ;;  %559 = vpow2.f32 %v497_v41 }
  0xb6   :  { %v246_v49 = vsub.f32 1.0, %v245_v45  ;;  %v852_v51 = vadd.f32 1.0, %v552_v47  ;;  %v417_v52 = vsel %vm416_vm3, %v546_v19, %v413_v48  ;;  %v255_v54 = vand.u32 2147483648, %v794_v4 }
  0xb7   :  { %561 = vpow2.f32 %v501_v42  ;;  %v505_v56 = vmul.f32 -1.442695, %v148_v37  ;;  %v422_v57 = vsel %vm835_vm1, %v421_v40, %v417_v52  ;;  %vm250_vm4 = vweird.f32 %v550_v38 }
  0xb8   :  { %v554_v53 = vpop.eup %553  ;;  %v247_v58 = vmul.f32 %v550_v38, %v246_v49  ;;  %563 = vrcp.f32 %v852_v51  ;;  %467 = vst.msk [vmem:[%s953_s3 + $0x68] sm:$0xff] %vm36_vm0, %v422_v57  ;;  %vm251_vm5 = vmor %vm249_vm2, %vm250_vm4  ;;  %v256_v55 = vor.u32 1.1754944e-38, %v255_v54  ;;  %vm254_vm6 = vcmp.eq.f32.partialorder %v253_v50, 8.507059e+37 }
  0xb9   :  { %v556_v46 = vpop.eup %555  ;;  %v862_v59 = vadd.f32 1.0, %v554_v53  ;;  %565 = vpow2.f32 %v505_v56  ;;  %v313_v6 = vand.u32 2147483647, %v830_v36  ;;  %v315_v4 = vand.u32 2147483648, %v830_v36 }
  0xba   :  { %v558_v60 = vpop.eup %557  ;;  %v248_v61 = vadd.f32 %v550_v38, %v247_v58  ;;  %v864_v62 = vadd.f32 1.0, %v556_v46  ;;  %vm309_vm7 = vweird.f32 %v830_v36  ;;  %v373_v13 = vand.u32 2147483647, %v852_v51 }
  0xbb   :  { %v305_v63 = vmul.f32 %v558_v60, %v830_v36  ;;  %v560_v0 = vpop.eup %559  ;;  %567 = vrcp.f32 %v862_v59  ;;  %vm310_vm8 = vweird.f32 %v558_v60  ;;  %v375_v14 = vand.u32 2147483648, %v852_v51 }
  0xbc   :  { %v252_v1 = vsel %vm251_vm5, %v550_v38, %v248_v61  ;;  %569 = vrcp.f32 %v864_v62  ;;  %v881_v15 = vadd.f32 1.0, %v560_v0  ;;  %vm314_vm9 = vcmp.eq.f32.partialorder %v313_v6, 8.507059e+37  ;;  %vm311_vm10 = vmor %vm309_vm7, %vm310_vm8 }
  0xbd   :  { %v562_v2 = vpop.eup %561  ;;  %v257_v3 = vsel %vm254_vm6, %v256_v55, %v252_v1  ;;  %v306_v5 = vsub.f32 1.0, %v305_v63  ;;  %v316_v20 = vor.u32 1.1754944e-38, %v315_v4  ;;  %vm369_vm11 = vweird.f32 %v852_v51 }
  0xbe   :  { %v564_v7 = vpop.eup %563  ;;  %456 = vst.msk [vmem:[%s953_s3 + $0x10] sm:$0xff] %vm36_vm0, %v257_v3  ;;  %v883_v17 = vadd.f32 1.0, %v562_v2  ;;  %571 = vrcp.f32 %v881_v15  ;;  %vm890_vm13 = vcmp.eq.f32.partialorder %v373_v13, 8.507059e+37  ;;  %v376_v27 = vor.u32 1.1754944e-38, %v375_v14 }
  0xbf   :  { %v307_v8 = vmul.f32 %v558_v60, %v306_v5  ;;  %v365_v9 = vmul.f32 %v564_v7, %v852_v51  ;;  %v566_v10 = vpop.eup %565  ;;  %vm370_vm12 = vweird.f32 %v564_v7  ;;  %v433_v31 = vand.u32 2147483647, %v862_v59 }
  0xc0   :  { %v888_v24 = vadd.f32 1.0, %v566_v10  ;;  %573 = vrcp.f32 %v883_v17  ;;  %vm371_vm14 = vmor %vm369_vm11, %vm370_vm12  ;;  %v435_v32 = vand.u32 2147483648, %v862_v59  ;;  %vm264_vm15 = vweird.f32 %v864_v62 }
  0xc1   :  { %v308_v11 = vadd.f32 %v558_v60, %v307_v8  ;;  %v366_v16 = vsub.f32 1.0, %v365_v9  ;;  %v568_v19 = vpop.eup %567  ;;  %v270_v34 = vand.u32 2147483648, %v864_v62  ;;  %v268_v41 = vand.u32 2147483647, %v864_v62 }
  0xc2   :  { %v570_v21 = vpop.eup %569  ;;  %v425_v12 = vmul.f32 %v568_v19, %v862_v59  ;;  %vm430_vm1 = vweird.f32 %v568_v19  ;;  %575 = vrcp.f32 %v888_v24  ;;  %vm429_vm3 = vweird.f32 %v862_v59 }
  0xc3   :  { %v312_v22 = vsel %vm311_vm10, %v558_v60, %v308_v11  ;;  %v367_v23 = vmul.f32 %v564_v7, %v366_v16  ;;  %v260_v28 = vmul.f32 %v570_v21, %v864_v62  ;;  %vm265_vm2 = vweird.f32 %v570_v21  ;;  %vm431_vm4 = vmor %vm429_vm3, %vm430_vm1 }
  0xc4   :  { %v317_v25 = vsel %vm314_vm9, %v316_v20, %v312_v22  ;;  %v426_v30 = vsub.f32 1.0, %v425_v12  ;;  %v572_v37 = vpop.eup %571  ;;  %vm434_vm5 = vcmp.eq.f32.partialorder %v433_v31, 8.507059e+37  ;;  %v436_v44 = vor.u32 1.1754944e-38, %v435_v32  ;;  %vm266_vm6 = vmor %vm264_vm15, %vm265_vm2 }
  0xc5   :  { %460 = vst.msk [vmem:[%s953_s3 + $0x30] sm:$0xff] %vm36_vm0, %v317_v25  ;;  %v368_v29 = vadd.f32 %v564_v7, %v367_v23  ;;  %v261_v33 = vsub.f32 1.0, %v260_v28  ;;  %v320_v43 = vmul.f32 %v572_v37, %v881_v15  ;;  %v271_v47 = vor.u32 1.1754944e-38, %v270_v34 }
  0xc6   :  { %v427_v36 = vmul.f32 %v568_v19, %v426_v30  ;;  %v574_v18 = vpop.eup %573  ;;  %v328_v49 = vand.u32 2147483647, %v881_v15  ;;  %v330_v50 = vand.u32 2147483648, %v881_v15  ;;  %vm269_vm7 = vcmp.eq.f32.partialorder %v268_v41, 8.507059e+37 }
  0xc7   :  { %v372_v35 = vsel %vm371_vm14, %v564_v7, %v368_v29  ;;  %v262_v39 = vmul.f32 %v570_v21, %v261_v33  ;;  %v321_v40 = vsub.f32 1.0, %v320_v43  ;;  %v380_v54 = vmul.f32 %v574_v18, %v883_v17 }
  0xc8   :  { %v377_v38 = vsel %vm890_vm13, %v376_v27, %v372_v35  ;;  %v428_v42 = vadd.f32 %v568_v19, %v427_v36  ;;  %v576_v56 = vpop.eup %575  ;;  %vm324_vm8 = vweird.f32 %v881_v15  ;;  %vm325_vm9 = vweird.f32 %v572_v37 }
  0xc9   :  { %464 = vst.msk [vmem:[%s953_s3 + $0x50] sm:$0xff] %vm36_vm0, %v377_v38  ;;  %v263_v45 = vadd.f32 %v570_v21, %v262_v39  ;;  %v322_v57 = vmul.f32 %v572_v37, %v321_v40  ;;  %v381_v58 = vsub.f32 1.0, %v380_v54  ;;  %v440_v46 = vmul.f32 %v576_v56, %v888_v24  ;;  %vm326_vm11 = vmor %vm324_vm8, %vm325_vm9 }
  0xca   :  { %v432_v48 = vsel %vm431_vm4, %v568_v19, %v428_v42  ;;  %vm329_vm10 = vcmp.eq.f32.partialorder %v328_v49, 8.507059e+37  ;;  %v331_v60 = vor.u32 1.1754944e-38, %v330_v50  ;;  %v390_v61 = vand.u32 2147483648, %v883_v17 }
  0xcb   :  { %v437_v51 = vsel %vm434_vm5, %v436_v44, %v432_v48  ;;  %v267_v52 = vsel %vm266_vm6, %v570_v21, %v263_v45  ;;  %v323_v59 = vadd.f32 %v572_v37, %v322_v57  ;;  %v382_v62 = vmul.f32 %v574_v18, %v381_v58 }
  0xcc   :  { %468 = vst.msk [vmem:[%s953_s3 + $0x70] sm:$0xff] %vm36_vm0, %v437_v51  ;;  %v272_v53 = vsel %vm269_vm7, %v271_v47, %v267_v52  ;;  %vm385_vm12 = vweird.f32 %v574_v18  ;;  %v388_v55 = vand.u32 2147483647, %v883_v17  ;;  %v441_v63 = vsub.f32 1.0, %v440_v46 }
  0xcd   :  { %457 = vst.msk [vmem:[%s953_s3 + $0x18] sm:$0xff] %vm36_vm0, %v272_v53  ;;  %v327_v0 = vsel %vm326_vm11, %v572_v37, %v323_v59  ;;  %vm384_vm13 = vweird.f32 %v883_v17  ;;  %v448_v1 = vand.u32 2147483647, %v888_v24  ;;  %v450_v2 = vand.u32 2147483648, %v888_v24 }
  0xce   :  { %v332_v3 = vsel %vm329_vm10, %v331_v60, %v327_v0  ;;  %v383_v5 = vadd.f32 %v574_v18, %v382_v62  ;;  %v442_v6 = vmul.f32 %v576_v56, %v441_v63  ;;  %vm445_vm14 = vweird.f32 %v576_v56  ;;  %vm386_vm15 = vmor %vm384_vm13, %vm385_vm12 }
  0xcf   :  { %461 = vst.msk [vmem:[%s953_s3 + $0x38] sm:$0xff] %vm36_vm0, %v332_v3  ;;  %v391_v7 = vor.u32 1.1754944e-38, %v390_v61  ;;  %vm389_vm1 = vcmp.eq.f32.partialorder %v388_v55, 8.507059e+37  ;;  %vm444_vm2 = vweird.f32 %v888_v24  ;;  %v451_v10 = vor.u32 1.1754944e-38, %v450_v2 }
  0xd0   :  { %v387_v4 = vsel %vm386_vm15, %v574_v18, %v383_v5  ;;  %v443_v8 = vadd.f32 %v576_v56, %v442_v6  ;;  %vm446_vm3 = vmor %vm444_vm2, %vm445_vm14  ;;  %vm449_vm4 = vcmp.eq.f32.partialorder %v448_v1, 8.507059e+37 }
  0xd1   :  { %v392_v9 = vsel %vm389_vm1, %v391_v7, %v387_v4 }
  0xd2   :  { %465 = vst.msk [vmem:[%s953_s3 + $0x58] sm:$0xff] %vm36_vm0, %v392_v9  ;;  %v447_v13 = vsel %vm446_vm3, %v576_v56, %v443_v8 }
  0xd3   :  { %v452_v14 = vsel %vm449_vm4, %v451_v10, %v447_v13 }
  0xd4   :  { %469 = vst.msk [vmem:[%s953_s3 + $0x78] sm:$0xff] %vm36_vm0, %v452_v14 }

</bundles_post_ra>
